<compile_context>
chip_gen: v6e
topology: v6e:2x2x1
jax: 0.10.0
libtpu: 0.0.40
codegen_flags: <defaults>
</compile_context>

<pallas_src>
import functools

import jax
import jax.numpy as jnp
from jax.experimental import pallas as pl
from jax.experimental.pallas import tpu as pltpu


def _to_i32(v):
    """Python int -> int32 two's-complement value (for >2^31 hash constants)."""
    return ((v + 0x80000000) & 0xFFFFFFFF) - 0x80000000


_GOLD = _to_i32(0x9E3779B1)
_MIX1 = _to_i32(0x85EBCA6B)
_MIX2 = _to_i32(0xC2B2AE35)


def _round_up(x, m):
    return ((x + m - 1) // m) * m


def _srl(x, k):
    """Logical right shift for int32 (arithmetic shift + low-bit mask)."""
    return (x >> k) & jnp.int32((1 << (32 - k)) - 1)


def _hash_uniform(idx, seed):
    """Counter-based hash of int32 indices -> uniform f32 in [0, 1)."""
    x = (idx ^ seed) * jnp.int32(_GOLD)
    x = x ^ _srl(x, 16)
    x = x * jnp.int32(_MIX1)
    x = x ^ _srl(x, 13)
    x = x * jnp.int32(_MIX2)
    x = x ^ _srl(x, 16)
    # top 24 bits -> exact f32 in [0, 1)
    return _srl(x, 8).astype(jnp.float32) * jnp.float32(1.0 / 16777216.0)


def _embed_dropout_kernel(seed_ref, ids_ref, table_ref, out_ref, *, p, train):
    # seed_ref  : SMEM scalar-prefetch ref, shape (1,) int32
    # ids_ref   : (TB, 1)  int32 VMEM block of token ids (column layout)
    # table_ref : (V, E)   VMEM-resident embedding table
    # out_ref   : (TB, E)  output block
    TB = out_ref.shape[0]
    V, E = table_ref.shape

    ids_blk = ids_ref[...]                                        # (TB, 1) int32
    vocab_iota = jax.lax.broadcasted_iota(jnp.int32, (TB, V), 1)  # (TB, V)
    onehot = (ids_blk == vocab_iota).astype(table_ref.dtype)      # (TB, V)
    gathered = jnp.dot(onehot, table_ref[...],
                       preferred_element_type=jnp.float32)        # (TB, E) f32

    if train and p >= 1.0:
        result = jnp.zeros_like(gathered)
    elif train and p > 0.0:
        blk = pl.program_id(0)
        row = jax.lax.broadcasted_iota(jnp.int32, (TB, E), 0) + blk * TB
        col = jax.lax.broadcasted_iota(jnp.int32, (TB, E), 1)
        u = _hash_uniform(row * jnp.int32(E) + col, seed_ref[0])
        keep = u >= jnp.float32(p)
        scale = jnp.float32(1.0 / (1.0 - p))
        result = jnp.where(keep, gathered * scale, 0.0)
    else:
        result = gathered

    out_ref[...] = result.astype(out_ref.dtype)


def embedding_forward(ids, table, *, p=0.1, train=False, seed=0,
                      block_tokens=256):
    """Embedding lookup + dropout.

    ids:   [B, S] int32 token indices
    table: [V, E] float32 embedding table (row `pad_id` pre-zeroed)
    returns [B, S, E] in table.dtype
    """
    B, S = ids.shape
    V, E = table.shape
    T = B * S

    # Token-block tiling: TB a multiple of 8 (sublane-dense output blocks).
    TB = _round_up(min(block_tokens, _round_up(T, 8)), 8)
    T_pad = _round_up(T, TB)
    num_blocks = T_pad // TB

    ids_flat = ids.reshape(T).astype(jnp.int32)
    if T_pad != T:
        ids_flat = jnp.concatenate(
            [ids_flat, jnp.zeros((T_pad - T,), dtype=jnp.int32)])
    ids_col = ids_flat.reshape(T_pad, 1)            # column layout -> (TB,1) blocks
    seed_arr = jnp.array([seed], dtype=jnp.int32)

    elem = jnp.dtype(table.dtype).itemsize
    # Rough VMEM footprint: resident table + double-buffered out/id blocks +
    # in-kernel one-hot / f32 temporaries.
    vmem_est = (V * E * elem + 2 * TB * E * elem + 2 * TB * 4
                + TB * V * 4 + 2 * TB * E * 4)
    vmem_limit = None
    if vmem_est > 24 * 1024 * 1024:
        vmem_limit = int(min(2 * vmem_est, 100 * 1024 * 1024))

    cost = pl.CostEstimate(
        flops=2 * T_pad * V * E,
        transcendentals=0,
        bytes_accessed=int(T_pad * 4 + V * E * elem + T_pad * E * elem),
    )

    grid_spec = pltpu.PrefetchScalarGridSpec(
        num_scalar_prefetch=1,                      # seed lands in SMEM
        grid=(num_blocks,),
        in_specs=[
            pl.BlockSpec((TB, 1), lambda i, seed_s: (i, 0)),   # token ids
            pl.BlockSpec((V, E), lambda i, seed_s: (0, 0)),    # resident table
        ],
        out_specs=pl.BlockSpec((TB, E), lambda i, seed_s: (i, 0)),
    )

    out_flat = pl.pallas_call(
        functools.partial(_embed_dropout_kernel, p=float(p), train=bool(train)),
        out_shape=jax.ShapeDtypeStruct((T_pad, E), table.dtype),
        grid_spec=grid_spec,
        compiler_params=pltpu.CompilerParams(
            dimension_semantics=("parallel",),
            vmem_limit_bytes=vmem_limit),
        cost_estimate=cost,
    )(seed_arr, ids_col, table)

    return out_flat[:T].reshape(B, S, E)


if __name__ == "__main__":
    # Small, deterministic setup consistent with the module:
    #   num_vocab=64, embedding_size=128, pad_id=0, dropout=0.1
    #   input x: [batch=2, seq=8] token ids
    num_vocab, embedding_size, pad_id, p_drop = 64, 128, 0, 0.1
    batch, seq = 2, 8

    key = jax.random.PRNGKey(0)
    k_table, k_ids = jax.random.split(key)

    # nn.Embedding init ~ N(0, 1); padding_idx row is zeroed.
    table = jax.random.normal(k_table, (num_vocab, embedding_size),
                              dtype=jnp.float32)
    table = table.at[pad_id].set(0.0)

    ids = jax.random.randint(k_ids, (batch, seq), 0, num_vocab,
                             dtype=jnp.int32)
    ids = ids.at[0, 0].set(pad_id).at[1, 3].set(pad_id)

    # Eval mode: dropout is the identity -> must equal a plain gather.
    out_eval = embedding_forward(ids, table, p=p_drop, train=False)
    jax.block_until_ready(out_eval)
    ref = jnp.take(table, ids.reshape(-1), axis=0).reshape(
        batch, seq, embedding_size)
    assert out_eval.shape == (batch, seq, embedding_size)
    assert bool(jnp.allclose(out_eval, ref, atol=1e-5)), "eval-mode mismatch"
    assert bool(jnp.all(out_eval[0, 0] == 0.0)), "padding row not zero"

    # Train mode: in-kernel dropout (deterministic seed). Every element must be
    # either exactly dropped (0) or kept-and-scaled by 1/(1-p).
    out_train = embedding_forward(ids, table, p=p_drop, train=True, seed=123)
    jax.block_until_ready(out_train)
    scaled = ref / (1.0 - p_drop)
    ok = jnp.logical_or(jnp.isclose(out_train, 0.0, atol=1e-6),
                        jnp.isclose(out_train, scaled, atol=1e-5, rtol=1e-5))
    assert bool(jnp.all(ok)), "train-mode dropout values inconsistent"

    # Drop rate sanity check over the non-padding (nonzero-reference) elements.
    nz = jnp.abs(ref) > 1e-6
    dropped = jnp.where(nz, jnp.abs(out_train) <= 1e-6, False)
    drop_frac = float(jnp.sum(dropped) / jnp.maximum(jnp.sum(nz), 1))
    assert 0.01 < drop_frac < 0.35, f"implausible drop fraction {drop_frac}"

    print("KERNEL_OK")
</pallas_src>

<mosaic_0001>
module attributes {stable_mosaic.version = 11 : i64} {
  func.func @_embed_dropout_kernel(%arg0: i32, %arg1: memref<1xi32, #tpu.memory_space<smem>>, %arg2: memref<16x1xi32, #tpu.memory_space<vmem>>, %arg3: memref<64x128xf32, #tpu.memory_space<vmem>>, %arg4: memref<16x128xf32, #tpu.memory_space<vmem>>) attributes {dimension_semantics = [#tpu.dimension_semantics<parallel>], iteration_bounds = array<i64: 1>, scalar_prefetch = 1 : i64, scratch_operands = 0 : i64, tpu.core_type = #tpu.core_type<tc>, window_params = [{transform_indices = @transform_0, window_bounds = array<i64: 16, 1>}, {pipeline_mode = #tpu.pipeline_mode<synchronous>, transform_indices = @transform_1, window_bounds = array<i64: 64, 128>}, {transform_indices = @transform_2, window_bounds = array<i64: 16, 128>}]} {
    %c0 = arith.constant 0 : index
    %c0_0 = arith.constant 0 : index
    %0 = vector.load %arg2[%c0, %c0_0] : memref<16x1xi32, #tpu.memory_space<vmem>>, vector<16x1xi32>
    %1 = tpu.iota {dimensions = array<i32: 1>} : vector<16x64xi32>
    %2 = vector.broadcast %0 : vector<16x1xi32> to vector<16x64xi32>
    %3 = arith.cmpi eq, %2, %1 : vector<16x64xi32>
    %4 = arith.extui %3 : vector<16x64xi1> to vector<16x64xi32>
    %5 = arith.sitofp %4 : vector<16x64xi32> to vector<16x64xf32>
    %c0_1 = arith.constant 0 : index
    %c0_2 = arith.constant 0 : index
    %6 = vector.load %arg3[%c0_1, %c0_2] : memref<64x128xf32, #tpu.memory_space<vmem>>, vector<64x128xf32>
    %cst = arith.constant dense<0.000000e+00> : vector<16x128xf32>
    %7 = tpu.matmul %5, %6, %cst {dimension_numbers = #tpu.dot_dimension_numbers<[1], [0], [0], [1], [0, 0, 1, 1], [], []>} : vector<16x64xf32>, vector<64x128xf32>, vector<16x128xf32> -> vector<16x128xf32>
    %c0_3 = arith.constant 0 : index
    %c0_4 = arith.constant 0 : index
    %8 = vector.load %arg4[%c0_3, %c0_4] : memref<16x128xf32, #tpu.memory_space<vmem>>, vector<16x128xf32>
    tpu.vector_store %arg4[%c0_3, %c0_4], %7 {strides = array<i32>} : memref<16x128xf32, #tpu.memory_space<vmem>>, vector<16x128xf32>,
    return
  }
  func.func @transform_0(%arg0: i32, %arg1: memref<1xi32, #tpu.memory_space<smem>>) -> (i32, i32) {
    %c0_i32 = arith.constant 0 : i32
    %c0_i32_0 = arith.constant 0 : i32
    return %arg0, %c0_i32 : i32, i32
  }
  func.func @transform_1(%arg0: i32, %arg1: memref<1xi32, #tpu.memory_space<smem>>) -> (i32, i32) {
    %c0_i32 = arith.constant 0 : i32
    %c0_i32_0 = arith.constant 0 : i32
    %c0_i32_1 = arith.constant 0 : i32
    return %c0_i32, %c0_i32_0 : i32, i32
  }
  func.func @transform_2(%arg0: i32, %arg1: memref<1xi32, #tpu.memory_space<smem>>) -> (i32, i32) {
    %c0_i32 = arith.constant 0 : i32
    %c0_i32_0 = arith.constant 0 : i32
    return %arg0, %c0_i32 : i32, i32
  }
}

</mosaic_0001>

<bundles_post_ra>
// kernel: tpu_custom_call.1
= control target key start
LH: loop header
LB: loop body
LE: loop exit
PB: predicated region body
PF: predicated region fallthrough
CT: control target
= control target key end

     0   :  { %9 = vsyncpa [#allocation5], 0  ;;  %s281_s0 = inlined_call_operand.<no memory space> [shape: s32[1], index: 0, kind: input, shape index: {}]   ;;  %s282_s1 = inlined_call_operand.vmem [shape: s32[16,1], index: 1, kind: input, shape index: {}]   ;;  %s283_s2 = inlined_call_operand.hbm [shape: f32[64,128], index: 2, kind: input, shape index: {}]   ;;  %s284_s3 = inlined_call_operand.hbm [shape: f32[16,128], index: 3, kind: output, shape index: {}]  }
   0x1   :  { %10 = vsyncpa [#allocation6], 0  ;;  %s237_s12 = smov [#allocation4]  }
   0x2   :  { %s18_s13 = sshll.u32 %s237_s12, 4  ;;  %s19_s13 = int_to_ptr.vmem [resolvable:$true] %s18_s13 }
   0x3   :  { %s201_s14 = scalar_lea.vmem %s19_s13, 1024  ;;  %p206_p1 = scmp.lt.s32.totalorder %s19_s13, %s19_s13 }
   0x4   :  { %p202_p0 = scmp.ne.s32.totalorder %s19_s13, %s201_s14  ;;  %p207_p2 = scmp.lt.s32.totalorder %s201_s14, %s201_s14 }
   0x6   :  { %p208_p3 = por %p207_p2, %p206_p1 }
   0x8   :  { %p209_p4 = pnand %p208_p3, %p202_p0 }
   0xa   :  { %212 = shalt.err (!%p209_p4)
}
   0xb   :  { %s238_s0 = smov 128   ;;  %s239_s15 = smov 8  }
   0xc   :  { %24 = dma.hbm_to_vmem [thread:$0]  %s283_s2, 1024, %s19_s13, [#allocation5], %s238_s0, %s238_s0, %s239_s15  }
   0xd   :  { %233 = dma.done.wait [#allocation5], 1024  }
   0xe   :  { %234 = vsyncadd [#allocation5], 4294966272  ;;  %v240_v0 = vmov 0   ;;  %v28_v1 = vld [vmem:[%s282_s1] sm:$0xff]  ;;  %v51_v2 = vld [vmem:[#allocation4 + $0x38] sm:$0xff]  ;;  %v30_v11 = vlaneseq  ;;  %vm52_vm0 = vcmask 523264  }
   0xf   :  { %192 = vset.pattern.permute.xlu0 %v240_v0  ;;  %167 = vmatprep.subr.mxu0 %v51_v2  ;;  %v50_v3 = vld [vmem:[#allocation4 + $0x30] sm:$0xff]  ;;  %v29_v4 = vld [vmem:[%s282_s1 + $0x8] sm:$0xff]  ;;  %v48_v6 = vld [vmem:[#allocation4 + $0x20] sm:$0xff]  ;;  %v241_v14 = vmov 0.0   ;;  %s242_s1 = smov [#allocation7]  }
  0x10   :  { %33 = vperm.xlu0 %192, %v28_v1   ;;  %168 = vmatpush3.msra.mxu0 %v51_v2  ;;  %v49_v5 = vld [vmem:[#allocation4 + $0x28] sm:$0xff]  ;;  %v47_v7 = vld [vmem:[#allocation4 + $0x18] sm:$0xff]  ;;  %v46_v8 = vld [vmem:[#allocation4 + $0x10] sm:$0xff]  ;;  %v31_v12 = vand.u32 127, %v30_v11  ;;  %s141_s2 = sshll.u32 %s242_s1, 4  ;;  %s142_s2 = int_to_ptr.vmem [resolvable:$true] %s141_s2 }
  0x11   :  { %169 = vmatprep.subr.mxu0 %v50_v3  ;;  %v45_v9 = vld [vmem:[#allocation4 + $0x8] sm:$0xff]  ;;  %v44_v10 = vld [vmem:[#allocation4] sm:$0xff]  ;;  %s213_s22 = scalar_lea.vmem %s142_s2, 256  ;;  %p218_p6 = scmp.lt.s32.totalorder %s142_s2, %s142_s2 }
  0x12   :  { %170 = vmatpush3.msra.mxu0 %v50_v3  ;;  %p214_p5 = scmp.ne.s32.totalorder %s142_s2, %s213_s22  ;;  %p219_p7 = scmp.lt.s32.totalorder %s213_s22, %s213_s22 }
  0x13   :  { %171 = vmatprep.subr.mxu0 %v49_v5 }
  0x14   :  { %36 = vperm.xlu0 %192, %v29_v4   ;;  %172 = vmatpush3.msra.mxu0 %v49_v5  ;;  %p220_p8 = por %p219_p7, %p218_p6 }
  0x15   :  { %173 = vmatprep.subr.mxu0 %v48_v6 }
  0x16   :  { %174 = vmatpush3.msra.mxu0 %v48_v6  ;;  %p221_p9 = pnand %p220_p8, %p214_p5 }
  0x17   :  { %175 = vmatprep.subr.mxu0 %v47_v7 }
  0x18   :  { %176 = vmatpush3.msra.mxu0 %v47_v7 }
  0x19   :  { %177 = vmatprep.subr.mxu0 %v46_v8 }
  0x1a   :  { %178 = vmatpush3.msra.mxu0 %v46_v8 }
  0x1b   :  { %179 = vmatprep.subr.mxu0 %v45_v9 }
  0x1c   :  { %180 = vmatpush3.msra.mxu0 %v45_v9 }
  0x1d   :  { %181 = vmatprep.subr.mxu0 %v44_v10 }
  0x1e   :  { %182 = vmatpush3.msra.mxu0 %v44_v10 }
  0x8b   :  { %v34_v13 = vpop.permute.xlu0 %33 }
  0x8c   :  { %vm38_vm1 = vcmp.eq.s32.totalorder %v34_v13, %v31_v12 }
  0x8d   :  { %v153_v15 = vsel %vm38_vm1, 1.0, %v241_v14 }
  0x8e   :  { %183 = vmatprep.mubr.msk.f32.mxu0 %vm52_vm0, %v153_v15 }
  0x8f   :  { %v37_v16 = vpop.permute.xlu0 %36 }
  0x90   :  { %vm39_vm2 = vcmp.eq.s32.totalorder %v37_v16, %v31_v12 }
  0x91   :  { %v154_v17 = vsel %vm39_vm2, 1.0, %v241_v14 }
  0x92   :  { %184 = vmatmul.mubr.msk.f32.vlgmr.msra.gmra.mxu0 %vm52_vm0, %v154_v17 }
 0x152   :  { %v185_v18 = vpop.f32.mrf.mxu0 }
 0x153   :  { %135 = vst [vmem:[#allocation7 + $0x8] sm:$0xff] %v185_v18 }
 0x154   :  { %v125_v19 = vpop.f32.mrf.mxu0 }
 0x155   :  { %134 = vst [vmem:[#allocation7] sm:$0xff] %v125_v19 }
 0x156   :  { %224 = shalt.err (!%p221_p9)
}
 0x157   :  { %147 = dma.vmem_to_hbm [thread:$0]  %s142_s2, 256, %s284_s3, [#allocation6], %s238_s0, %s238_s0, %s239_s15  }
 0x158   :  { %235 = dma.done.wait [#allocation6], 256  }
 0x159   :  { %236 = vsyncadd [#allocation6], 4294967040 }
 0x15a   :  { %151 = vsyncpa [#allocation5], 1 }
 0x15b   :  { %152 = vsyncpa [#allocation6], 1 }

</bundles_post_ra>
